<compile_context>
chip_gen: v6e
topology: v6e:2x2x1
jax: 0.10.0
libtpu: 0.0.40
codegen_flags: <defaults>
</compile_context>

<pallas_src>
import jax
import jax.numpy as jnp
from jax import lax
from jax.experimental import pallas as pl
from jax.experimental.pallas import tpu as pltpu

_BN_EPS = 1e-5
_BLOCK_BUDGET = 24 * 1024 * 1024      # budget for (double-buffered) blocks
_VMEM_HEADROOM = 8 * 1024 * 1024
_VMEM_CAP = 40 * 1024 * 1024          # well under v7x's 64 MiB physical VMEM


def _round_up(x, m):
    return (x + m - 1) // m * m


# --------------------------------------------------------------------------
# Kernels
# --------------------------------------------------------------------------
def _gram_stats_kernel(x_ref, g_ref, s_ref):
    """Pass 1 (Cout >= Cin): accumulate per-batch-block Gram matrix G = X X^T
    and column-sum s = X 1.  BN statistics of y = W x are recovered in the
    wrapper as sum = W s and ssq = rowsum((W G) * W)."""
    @pl.when(pl.program_id(1) == 0)
    def _():
        g_ref[...] = jnp.zeros_like(g_ref)
        s_ref[...] = jnp.zeros_like(s_ref)

    g = jnp.zeros(g_ref.shape[1:], jnp.float32)
    s = jnp.zeros(s_ref.shape[1:], jnp.float32)
    for b in range(x_ref.shape[0]):                      # static unroll over TB
        xb = x_ref[b]                                    # (Cin_p, TILE_L)
        g += lax.dot_general(xb, xb, (((1,), (1,)), ((), ())),
                             preferred_element_type=jnp.float32)
        s += jnp.sum(xb.astype(jnp.float32), axis=1, keepdims=True)
    g_ref[0] += g
    s_ref[0] += s


def _direct_stats_kernel(x_ref, w_ref, sum_ref, ssq_ref):
    """Pass 1 (Cin > Cout): y = W x per tile, per-channel sum / sum-of-squares
    accumulated with lane-axis (XLU) reductions."""
    @pl.when(pl.program_id(1) == 0)
    def _():
        sum_ref[...] = jnp.zeros_like(sum_ref)
        ssq_ref[...] = jnp.zeros_like(ssq_ref)

    w = w_ref[...]
    s = jnp.zeros(sum_ref.shape[1:], jnp.float32)
    q = jnp.zeros(ssq_ref.shape[1:], jnp.float32)
    for b in range(x_ref.shape[0]):                      # static unroll over TB
        y = jnp.dot(w, x_ref[b], preferred_element_type=jnp.float32)
        s += jnp.sum(y, axis=1, keepdims=True)
        q += jnp.sum(y * y, axis=1, keepdims=True)
    sum_ref[0] += s
    ssq_ref[0] += q


def _apply_kernel(x_ref, w_ref, shift_ref, o_ref):
    """Pass 2: y = (scale-folded W) @ x, add shift, ReLU."""
    w = w_ref[...]
    shift = shift_ref[...]                               # (Cout_p, 1) f32
    for b in range(x_ref.shape[0]):                      # static unroll over TB
        y = jnp.dot(w, x_ref[b], preferred_element_type=jnp.float32)
        o_ref[b] = jnp.maximum(y + shift, 0.0).astype(o_ref.dtype)


# --------------------------------------------------------------------------
# Wrapper
# --------------------------------------------------------------------------
def _choose_tiles(B, Cin_p, Cout_p, L, itemsize, acc_bytes):
    """Pick (TB, TILE_L) to amortize per-step overhead within the VMEM budget."""
    Lp = _round_up(L, 128)
    tl_cands = [t for t in (2048, 1024, 512, 256, 128) if t <= Lp]
    # TB must divide B; keep >= 2 batch blocks so v7x megacore has work to shard.
    tb_max = max(1, min(B // 2, 8)) if B >= 2 else 1
    tb_cands = [d for d in range(tb_max, 0, -1) if B % d == 0]

    def footprint(tb, tl):
        # double-buffered x + out blocks, both weight buffers, stat accumulators
        return ((2 * tb * (Cin_p + Cout_p) * tl + 2 * Cout_p * Cin_p) * itemsize
                + acc_bytes)

    for tl in tl_cands:
        for tb in tb_cands:
            if footprint(tb, tl) <= _BLOCK_BUDGET:
                return tb, tl, footprint(tb, tl)
    return 1, 128, footprint(1, 128)


def dense_layer(x, weight, bias=None, gamma=None, beta=None):
    """Forward of DenseLayer (default config 'batchnorm-relu', training mode).

    x      : (B, C_in, L) or (B, C_in)   -- NCL like the PyTorch module
    weight : (C_out, C_in, 1)            -- nn.Conv1d(.., kernel_size=1) weight
    bias   : ignored (exactly cancelled by BatchNorm's mean subtraction)
    gamma  : (C_out,) BatchNorm1d weight (default ones)
    beta   : (C_out,) BatchNorm1d bias   (default zeros)
    """
    del bias  # no-op under training-mode BatchNorm (mean subtraction cancels it)

    squeeze_back = False
    if x.ndim == 2:
        x = x[:, :, None]                 # matches `x.unsqueeze(dim=-1)`
        squeeze_back = True

    B, Cin, L = x.shape
    Cout = weight.shape[0]
    compute_dtype = x.dtype
    itemsize = jnp.dtype(compute_dtype).itemsize

    if gamma is None:
        gamma = jnp.ones((Cout,), jnp.float32)
    if beta is None:
        beta = jnp.zeros((Cout,), jnp.float32)

    # dtype-aware channel padding (bf16 packs 16 sublanes, int8/fp8 pack 32)
    sub = max(8, 32 // itemsize)
    Cin_p = _round_up(Cin, sub)
    Cout_p = _round_up(Cout, sub)

    use_gram = Cin_p <= Cout_p
    acc_bytes = 2 * (Cin_p * (Cin_p + 1) * 4 if use_gram else 2 * Cout_p * 4)

    TB, TILE_L, blk_bytes = _choose_tiles(B, Cin_p, Cout_p, L, itemsize, acc_bytes)
    L_pad = _round_up(L, TILE_L)
    nB, nL = B // TB, L_pad // TILE_L
    grid = (nB, nL)

    vmem_limit = int(min(max(blk_bytes + _VMEM_HEADROOM, 16 << 20), _VMEM_CAP))

    # Pad only when actually required (padding/cropping are extra HBM trips).
    # Zero padding is exact: padded Cin rows contribute 0 to the matmul/Gram,
    # padded L columns contribute 0 to the sums (we divide by the real count),
    # padded Cout rows are cropped off.
    if Cin_p != Cin or L_pad != L:
        x_p = jnp.pad(x, ((0, 0), (0, Cin_p - Cin), (0, L_pad - L)))
    else:
        x_p = x
    w2d = weight[:, :, 0].astype(compute_dtype)
    if Cout_p != Cout or Cin_p != Cin:
        w_p = jnp.pad(w2d, ((0, Cout_p - Cout), (0, Cin_p - Cin)))
    else:
        w_p = w2d

    x_spec = pl.BlockSpec((TB, Cin_p, TILE_L), lambda b, l: (b, 0, l))
    w_spec = pl.BlockSpec((Cout_p, Cin_p), lambda b, l: (0, 0))
    vec_spec = pl.BlockSpec((Cout_p, 1), lambda b, l: (0, 0))
    out_spec = pl.BlockSpec((TB, Cout_p, TILE_L), lambda b, l: (b, 0, l))

    x_bytes = B * Cin_p * L_pad * itemsize
    w_bytes = Cout_p * Cin_p * itemsize
    out_bytes = B * Cout_p * L_pad * itemsize
    mm_flops = 2 * B * Cin_p * Cout_p * L_pad

    # ---- pass 1: per-channel batch statistics (megacore-parallel over B) ----
    if use_gram:
        g_part, s_part = pl.pallas_call(
            _gram_stats_kernel,
            out_shape=(jax.ShapeDtypeStruct((nB, Cin_p, Cin_p), jnp.float32),
                       jax.ShapeDtypeStruct((nB, Cin_p, 1), jnp.float32)),
            grid_spec=pltpu.PrefetchScalarGridSpec(
                num_scalar_prefetch=0,
                grid=grid,
                in_specs=[x_spec],
                out_specs=[pl.BlockSpec((1, Cin_p, Cin_p), lambda b, l: (b, 0, 0)),
                           pl.BlockSpec((1, Cin_p, 1), lambda b, l: (b, 0, 0))],
            ),
            compiler_params=pltpu.CompilerParams(
                dimension_semantics=("parallel", "arbitrary"),
                vmem_limit_bytes=vmem_limit),
            cost_estimate=pl.CostEstimate(
                flops=2 * B * Cin_p * Cin_p * L_pad + 2 * B * Cin_p * L_pad,
                transcendentals=0,
                bytes_accessed=x_bytes + 4 * nB * Cin_p * (Cin_p + 1)),
        )(x_p)
        w_f32 = w_p.astype(jnp.float32)
        gram = jnp.sum(g_part, axis=0)                       # (Cin_p, Cin_p)
        s_vec = jnp.sum(s_part, axis=0)                      # (Cin_p, 1)
        ch_sum = w_f32 @ s_vec                               # (Cout_p, 1)
        ch_ssq = jnp.sum((w_f32 @ gram) * w_f32, axis=1, keepdims=True)
    else:
        sum_part, ssq_part = pl.pallas_call(
            _direct_stats_kernel,
            out_shape=(jax.ShapeDtypeStruct((nB, Cout_p, 1), jnp.float32),
                       jax.ShapeDtypeStruct((nB, Cout_p, 1), jnp.float32)),
            grid_spec=pltpu.PrefetchScalarGridSpec(
                num_scalar_prefetch=0,
                grid=grid,
                in_specs=[x_spec, w_spec],
                out_specs=[pl.BlockSpec((1, Cout_p, 1), lambda b, l: (b, 0, 0)),
                           pl.BlockSpec((1, Cout_p, 1), lambda b, l: (b, 0, 0))],
            ),
            compiler_params=pltpu.CompilerParams(
                dimension_semantics=("parallel", "arbitrary"),
                vmem_limit_bytes=vmem_limit),
            cost_estimate=pl.CostEstimate(
                flops=mm_flops + 4 * B * Cout_p * L_pad,
                transcendentals=0,
                bytes_accessed=x_bytes + w_bytes + 8 * nB * Cout_p),
        )(x_p, w_p)
        ch_sum = jnp.sum(sum_part, axis=0)                   # (Cout_p, 1)
        ch_ssq = jnp.sum(ssq_part, axis=0)                   # (Cout_p, 1)

    # ---- fold stats + affine params into weight (scale) and a shift vector --
    # NOTE: E[y^2]-E[y]^2 in f32 can cancel for extreme per-channel means;
    # clamped at 0 like most fused-BN implementations.
    n = jnp.float32(B * L)
    mean = ch_sum / n
    var = jnp.maximum(ch_ssq / n - mean * mean, 0.0)         # biased variance
    inv = lax.rsqrt(var + _BN_EPS)
    gamma_p = jnp.pad(gamma.astype(jnp.float32), (0, Cout_p - Cout)).reshape(Cout_p, 1)
    beta_p = jnp.pad(beta.astype(jnp.float32), (0, Cout_p - Cout)).reshape(Cout_p, 1)
    scale = gamma_p * inv                                    # (Cout_p, 1)
    shift = beta_p - mean * scale                            # (Cout_p, 1)
    # Fold scale into the tiny weight so pass 2 is dot + shift + ReLU only.
    w_scaled = (w_p.astype(jnp.float32) * scale).astype(compute_dtype)

    # ---- pass 2: matmul + shift + ReLU (both grid axes parallel) ------------
    out_p = pl.pallas_call(
        _apply_kernel,
        out_shape=jax.ShapeDtypeStruct((B, Cout_p, L_pad), compute_dtype),
        grid_spec=pltpu.PrefetchScalarGridSpec(
            num_scalar_prefetch=0,
            grid=grid,
            in_specs=[x_spec, w_spec, vec_spec],
            out_specs=out_spec,
        ),
        compiler_params=pltpu.CompilerParams(
            dimension_semantics=("parallel", "parallel"),
            vmem_limit_bytes=vmem_limit),
        cost_estimate=pl.CostEstimate(
            flops=mm_flops + 2 * B * Cout_p * L_pad,
            transcendentals=0,
            bytes_accessed=x_bytes + w_bytes + out_bytes),
    )(x_p, w_scaled, shift)

    out = out_p
    if Cout_p != Cout or L_pad != L:
        out = out[:, :Cout, :L]            # drop channel / length padding
    if squeeze_back:
        out = out[:, :, 0]                 # matches `.squeeze(dim=-1)`
    return out


# --------------------------------------------------------------------------
# Pure-JAX reference + self-test
# --------------------------------------------------------------------------
def _reference(x, weight, gamma, beta):
    """Conv1d(k=1, no bias) + BatchNorm1d (training-mode stats) + ReLU."""
    x3 = x[:, :, None] if x.ndim == 2 else x
    y = jnp.einsum('oc,bcl->bol', weight[:, :, 0].astype(jnp.float32),
                   x3.astype(jnp.float32))
    mean = jnp.mean(y, axis=(0, 2), keepdims=True)
    var = jnp.mean((y - mean) ** 2, axis=(0, 2), keepdims=True)
    yhat = (y - mean) / jnp.sqrt(var + _BN_EPS)
    out = jnp.maximum(yhat * gamma[None, :, None] + beta[None, :, None], 0.0)
    if x.ndim == 2:
        out = out[:, :, 0]
    return out.astype(x.dtype)


if __name__ == "__main__":
    key = jax.random.PRNGKey(0)
    k1, k2, k3, k4 = jax.random.split(key, 4)

    # Case 1: expansion layer (Cout >= Cin) -> Gram-accumulation stats path.
    B, Cin, Cout, L = 2, 4, 8, 16
    x = jax.random.normal(k1, (B, Cin, L), dtype=jnp.float32)
    weight = 0.1 * jax.random.normal(k2, (Cout, Cin, 1), dtype=jnp.float32)
    gamma = jnp.ones((Cout,), jnp.float32)
    beta = jnp.zeros((Cout,), jnp.float32)

    out = dense_layer(x, weight, None, gamma, beta)
    jax.block_until_ready(out)
    assert out.shape == (B, Cout, L), out.shape
    ref = _reference(x, weight, gamma, beta)
    assert jnp.allclose(out, ref, rtol=1e-3, atol=1e-3), \
        float(jnp.max(jnp.abs(out - ref)))

    # Case 1b: the 2-D input branch of forward().
    out2d = dense_layer(x[:, :, 0], weight, None, gamma, beta)
    jax.block_until_ready(out2d)
    assert out2d.shape == (B, Cout), out2d.shape
    ref2d = _reference(x[:, :, 0], weight, gamma, beta)
    assert jnp.allclose(out2d, ref2d, rtol=1e-3, atol=1e-3), \
        float(jnp.max(jnp.abs(out2d - ref2d)))

    # Case 2: contraction layer (Cin > Cout) -> direct per-channel stats path.
    B2, Cin2, Cout2, L2 = 4, 24, 8, 16
    x2 = jax.random.normal(k3, (B2, Cin2, L2), dtype=jnp.float32)
    weight2 = 0.1 * jax.random.normal(k4, (Cout2, Cin2, 1), dtype=jnp.float32)
    gamma2 = 0.5 + jax.random.uniform(k1, (Cout2,), dtype=jnp.float32)
    beta2 = 0.1 * jax.random.normal(k2, (Cout2,), dtype=jnp.float32)

    out2 = dense_layer(x2, weight2, None, gamma2, beta2)
    jax.block_until_ready(out2)
    assert out2.shape == (B2, Cout2, L2), out2.shape
    ref2 = _reference(x2, weight2, gamma2, beta2)
    assert jnp.allclose(out2, ref2, rtol=1e-3, atol=1e-3), \
        float(jnp.max(jnp.abs(out2 - ref2)))

    print("KERNEL_OK")
</pallas_src>

<mosaic_0001>
module attributes {stable_mosaic.version = 11 : i64} {
  func.func @_gram_stats_kernel(%arg0: i32, %arg1: i32, %arg2: memref<1x8x128xf32, #tpu.memory_space<vmem>>, %arg3: memref<1x8x8xf32, #tpu.memory_space<vmem>>, %arg4: memref<1x8x1xf32, #tpu.memory_space<vmem>>) attributes {dimension_semantics = [#tpu.dimension_semantics<parallel>, #tpu.dimension_semantics<arbitrary>], iteration_bounds = array<i64: 2, 1>, scalar_prefetch = 0 : i64, scratch_operands = 0 : i64, tpu.core_type = #tpu.core_type<tc>, window_params = [{transform_indices = @transform_0, window_bounds = array<i64: 1, 8, 128>}, {transform_indices = @transform_1, window_bounds = array<i64: 1, 8, 8>}, {transform_indices = @transform_2, window_bounds = array<i64: 1, 8, 1>}]} {
    %c0_i32 = arith.constant 0 : i32
    %0 = arith.cmpi eq, %arg1, %c0_i32 : i32
    %1 = arith.extui %0 : i1 to i32
    %c0_i32_0 = arith.constant 0 : i32
    %2 = arith.cmpi ne, %1, %c0_i32_0 : i32
    scf.if %2 {
      %cst_18 = arith.constant 0.000000e+00 : f32
      %24 = vector.broadcast %cst_18 : f32 to vector<1x8x8xf32>
      %c0_19 = arith.constant 0 : index
      %c0_20 = arith.constant 0 : index
      %c0_21 = arith.constant 0 : index
      %25 = vector.load %arg3[%c0_19, %c0_20, %c0_21] : memref<1x8x8xf32, #tpu.memory_space<vmem>>, vector<1x8x8xf32>
      tpu.vector_store %arg3[%c0_19, %c0_20, %c0_21], %24 {strides = array<i32>} : memref<1x8x8xf32, #tpu.memory_space<vmem>>, vector<1x8x8xf32>,
      %cst_22 = arith.constant 0.000000e+00 : f32
      %26 = vector.broadcast %cst_22 : f32 to vector<1x8x1xf32>
      %c0_23 = arith.constant 0 : index
      %c0_24 = arith.constant 0 : index
      %c0_25 = arith.constant 0 : index
      %27 = vector.load %arg4[%c0_23, %c0_24, %c0_25] : memref<1x8x1xf32, #tpu.memory_space<vmem>>, vector<1x8x1xf32>
      tpu.vector_store %arg4[%c0_23, %c0_24, %c0_25], %26 {strides = array<i32>} : memref<1x8x1xf32, #tpu.memory_space<vmem>>, vector<1x8x1xf32>,
    } else {
    }
    %cst = arith.constant 0.000000e+00 : f32
    %3 = vector.broadcast %cst : f32 to vector<8x8xf32>
    %cst_1 = arith.constant 0.000000e+00 : f32
    %4 = vector.broadcast %cst_1 : f32 to vector<8x1xf32>
    %c0 = arith.constant 0 : index
    %c0_2 = arith.constant 0 : index
    %c0_3 = arith.constant 0 : index
    %5 = vector.load %arg2[%c0, %c0_2, %c0_3] : memref<1x8x128xf32, #tpu.memory_space<vmem>>, vector<1x8x128xf32>
    %6 = vector.shape_cast %5 : vector<1x8x128xf32> to vector<8x128xf32>
    %cst_4 = arith.constant dense<0.000000e+00> : vector<8x8xf32>
    %7 = tpu.matmul %6, %6, %cst_4 {dimension_numbers = #tpu.dot_dimension_numbers<[1], [1], [0], [0], [0, 0, 1, 0], [], []>} : vector<8x128xf32>, vector<8x128xf32>, vector<8x8xf32> -> vector<8x8xf32>
    %8 = arith.addf %3, %7 : vector<8x8xf32>
    %cst_5 = arith.constant dense<0.000000e+00> : vector<8xf32>
    %9 = vector.multi_reduction <add>, %6, %cst_5 [1] : vector<8x128xf32> to vector<8xf32>
    %10 = vector.shape_cast %9 : vector<8xf32> to vector<8x1xf32>
    %11 = arith.addf %4, %10 : vector<8x1xf32>
    %c0_6 = arith.constant 0 : index
    %c0_7 = arith.constant 0 : index
    %c0_8 = arith.constant 0 : index
    %12 = vector.load %arg3[%c0_6, %c0_7, %c0_8] : memref<1x8x8xf32, #tpu.memory_space<vmem>>, vector<1x8x8xf32>
    %13 = vector.shape_cast %12 : vector<1x8x8xf32> to vector<8x8xf32>
    %14 = arith.addf %13, %8 : vector<8x8xf32>
    %c0_9 = arith.constant 0 : index
    %c0_10 = arith.constant 0 : index
    %c0_11 = arith.constant 0 : index
    %15 = vector.load %arg3[%c0_9, %c0_10, %c0_11] : memref<1x8x8xf32, #tpu.memory_space<vmem>>, vector<1x8x8xf32>
    %16 = vector.shape_cast %15 : vector<1x8x8xf32> to vector<8x8xf32>
    %17 = vector.shape_cast %14 : vector<8x8xf32> to vector<1x8x8xf32>
    tpu.vector_store %arg3[%c0_9, %c0_10, %c0_11], %17 {strides = array<i32>} : memref<1x8x8xf32, #tpu.memory_space<vmem>>, vector<1x8x8xf32>,
    %c0_12 = arith.constant 0 : index
    %c0_13 = arith.constant 0 : index
    %c0_14 = arith.constant 0 : index
    %18 = vector.load %arg4[%c0_12, %c0_13, %c0_14] : memref<1x8x1xf32, #tpu.memory_space<vmem>>, vector<1x8x1xf32>
    %19 = vector.shape_cast %18 : vector<1x8x1xf32> to vector<8x1xf32>
    %20 = arith.addf %19, %11 : vector<8x1xf32>
    %c0_15 = arith.constant 0 : index
    %c0_16 = arith.constant 0 : index
    %c0_17 = arith.constant 0 : index
    %21 = vector.load %arg4[%c0_15, %c0_16, %c0_17] : memref<1x8x1xf32, #tpu.memory_space<vmem>>, vector<1x8x1xf32>
    %22 = vector.shape_cast %21 : vector<1x8x1xf32> to vector<8x1xf32>
    %23 = vector.shape_cast %20 : vector<8x1xf32> to vector<1x8x1xf32>
    tpu.vector_store %arg4[%c0_15, %c0_16, %c0_17], %23 {strides = array<i32>} : memref<1x8x1xf32, #tpu.memory_space<vmem>>, vector<1x8x1xf32>,
    return
  }
  func.func @transform_0(%arg0: i32, %arg1: i32) -> (i32, i32, i32) {
    %c0_i32 = arith.constant 0 : i32
    %c0_i32_0 = arith.constant 0 : i32
    return %arg0, %c0_i32, %arg1 : i32, i32, i32
  }
  func.func @transform_1(%arg0: i32, %arg1: i32) -> (i32, i32, i32) {
    %c0_i32 = arith.constant 0 : i32
    %c0_i32_0 = arith.constant 0 : i32
    %c0_i32_1 = arith.constant 0 : i32
    return %arg0, %c0_i32, %c0_i32_0 : i32, i32, i32
  }
  func.func @transform_2(%arg0: i32, %arg1: i32) -> (i32, i32, i32) {
    %c0_i32 = arith.constant 0 : i32
    %c0_i32_0 = arith.constant 0 : i32
    %c0_i32_1 = arith.constant 0 : i32
    return %arg0, %c0_i32, %c0_i32_0 : i32, i32, i32
  }
}

</mosaic_0001>

<bundles_post_ra>
// kernel: tpu_custom_call.1
= control target key start
LH: loop header
LB: loop body
LE: loop exit
PB: predicated region body
PF: predicated region fallthrough
CT: control target
= control target key end

     0   :  { %8 = vsyncpa [#allocation3], 0  ;;  %s760_s0 = inlined_call_operand.hbm [shape: f32[2,8,128], index: 0, kind: input, shape index: {}]   ;;  %s761_s1 = inlined_call_operand.hbm [shape: f32[2,8,8], index: 1, kind: output, shape index: {0}]   ;;  %s762_s2 = inlined_call_operand.vmem [shape: f32[2,8,1], index: 2, kind: output, shape index: {1}]  }
   0x1   :  { %10 = vsyncpa [#allocation3 + $0x1], 0 }
   0x2   :  { %11 = vsyncpa [#allocation4], 0 }
   0x3   :  { %13 = vsyncpa [#allocation4 + $0x1], 0  ;;  %s613_s9 = smov 0   ;;  %s615_s10 = smov 0  }
   0x4   :  { %s617_s11 = smov 0   ;;  %s619_s12 = smov 0  }
   0x5   :  { %s621_s13 = smov 0   ;;  %s623_s14 = smov 0  }
   0x6 LB: > { %s399_s15 = sadd.s32 4294967295, %s592_s14   ;;  %s400_s16 = sadd.s32 4294967294, %s592_s14   ;;  %s592_s14 = sphi %s623_s14, %s19_s14   ;;  %s588_s13 = sphi %s621_s13, %s774_s13   ;;  %s584_s12 = sphi %s619_s12, %s773_s12   ;;  %s580_s11 = sphi %s617_s11, %s772_s11   ;;  %s576_s10 = sphi %s615_s10, %s771_s10   ;;  %s572_s9 = sphi %s613_s9, %s770_s9  }
   0x7   : > { %s31_s17 = sadd.s32 1, %s588_s13  ;;  %s40_s18 = sadd.s32 1, %s580_s11 }
   0x8   : > { %p33_p0 = scmp.ge.s32.totalorder %s31_s17, 2  ;;  %p47_p1 = scmp.ne.s32.totalorder %s580_s11, %s576_s10 }
   0x9   : > { %p48_p2 = scmp.eq.s32.totalorder %s592_s14, 0  ;;  %p53_p3 = scmp.ne.s32.totalorder %s576_s10, %s572_s9 }
   0xa   : > { %s776_s17 = smov (%p33_p0, %s31_s17), 0  ;;  %p54_p5 = scmp.eq.s32.totalorder %s399_s15, 0 }
   0xb   : > { %p654_p4 = por %p48_p2, %p47_p1  ;;  %s35_s20 = ssub.s32 %s588_s13, %s776_s17 }
   0xc   : > { %p77_p6 = scmp.eq.s32.totalorder %s399_s15, 1  ;;  %p38_p7 = scmp.eq.s32.totalorder %s35_s20, 0 }
   0xd   : > { %p660_p8 = por %p54_p5, %p53_p3  ;;  %p83_p10 = scmp.eq.s32.totalorder %s400_s16, 1 }
   0xe   : > { %p664_p9 = por %p77_p6, %p47_p1  ;;  %p432_p13 = scmp.lt.s32.totalorder %s592_s14, 2 }
   0xf   : > { %s669_s23 = scalar_select %p38_p7, %s580_s11, %s40_s18  }
  0x10   : > { %p671_p11 = por %p83_p10, %p53_p3  ;;  %s129_s25 = sand.u32 1, %s580_s11  }
  0x11   : > { %s403_s26 = sshll.u32 %s129_s25, 3  ;;  %s404_s27 = sshll.u32 %s588_s13, 7 }
  0x12   : > { %s766_s24 = scalar_select %p671_p11, 1, 0 }
  0x13   : > { %s139_s30 = scalar_lea.hbm %s760_s0, %s404_s27  ;;  %s133_s3 = scalar_lea.vmem [#allocation2], %s403_s26 }
  0x14   : > { %s141_s4 = sshll.u32 %s133_s3, 4  ;;  %p684_p0 = pnand %p432_p13, %p654_p4  ;;  %s142_s4 = int_to_ptr.vmem [resolvable:$true] %s141_s4 }
  0x15   : > { %p405_p1 = scmp.ge.s32.totalorder %s592_s14, 1  ;;  %p146_p2 = scmp.lt.s32.totalorder %s592_s14, 3 }
  0x16   : > { %s130_s6 = scalar_lea.sflag [#allocation3], %s129_s25  ;;  %p486_p3 = pneg %p684_p0 }
  0x17   : > { %s497_s7 = scalar_lea.vmem %s142_s4, 128  ;;  %s594_s8 = smov [#allocation2]  }
  0x18   : > { %p498_p5 = scmp.ne.s32.totalorder %s142_s4, %s497_s7  ;;  %s502_s15 = sshll.u32 %s594_s8, 4  ;;  %s503_s15 = int_to_ptr.vmem [resolvable:$false] %s502_s15 }
  0x19   : > { %s504_s16 = scalar_lea.vmem %s503_s15, 256  ;;  %p505_p10 = scmp.lt.s32.totalorder %s142_s4, %s503_s15 }
  0x1a   : > { %p500_p6 = pnand %p498_p5, %p486_p3  ;;  %p506_p12 = scmp.lt.s32.totalorder %s504_s16, %s497_s7 }
  0x1c   : > { %p501_p7 = pneg %p500_p6  ;;  %p507_p4 = por %p506_p12, %p505_p10 }
  0x1e   : > { %p508_p13 = pnand %p507_p4, %p501_p7 }
  0x20   : > { %511 = shalt.err (!%p508_p13)
}
  0x21   : > { %427 = dma.hbm_to_vmem [thread:$0]  (!%p684_p0), %s139_s30, 128, %s142_s4, %s130_s6  }
  0x22   : > { %p147_p11 = pnand %p405_p1, %p146_p2 }
  0x23   : > { %s699_s18 = sand.u32 (!%p147_p11), 1, %s576_s10  }
  0x24   : > { %150 = sbr.rel (%p147_p11) target bundleno = 255 (0xff), region = 24  ;;  %s406_s19 = sshll.u32 (!%p147_p11), %s699_s18, 3 }
  0x25   : > { %s153_s20 = scalar_lea.sflag (!%p147_p11), [#allocation3], %s699_s18  ;;  %s156_s25 = scalar_lea.vmem (!%p147_p11), [#allocation2], %s406_s19 }
  0x29   : > { %563 = dma.done.wait (%p660_p8), %s153_s20, 128  }
  0x2a   : > { %565 = vsyncadd (%p660_p8), %s153_s20, 4294967168  ;;  %vm189_vm0 = vcmask 64512   ;;  %v595_v0 = vmov 0.0   ;;  %vm596_vm1 = vmmov 0   ;;  %s174_s26 = scalar_lea.vmem [#allocation5], %s406_s19  ;;  %v193_v1 = vld [vmem:[%s156_s25] sm:$0xff] }
  0x2b   : > { %415 = vmatprep.subr.mxu0 %v595_v0  ;;  %417 = vmatprep.mubr.msk.f32.mxu0 %vm596_vm1, %v595_v0  ;;  %190 = vst.msk [vmem:[%s174_s26] sm:$0xff] %vm189_vm0, %v595_v0  ;;  %p181_p11 = scmp.lt.s32.totalorder %s584_s12, 1  ;;  %vm191_vm2 = vcmask 7168   ;;  %s410_s3 = sshll.u32 %s584_s12, 7 }
  0x2c   : > { %416 = vmatpush3.xpose.msra.mxu0 %v193_v1  ;;  %264 = vadd.xlane.f32.xlu0 %v193_v1  ;;  %s293_s4 = sshll.u32 %s174_s26, 4  ;;  %s717_s7 = scalar_lea.hbm %s761_s1, %s410_s3  ;;  %s294_s4 = int_to_ptr.vmem [resolvable:$true] %s293_s4 }
  0x2d   : > { %s182_s27 = scalar_select %p181_p11, %s584_s12, 1 }
  0x2e   : > { %s276_s8 = scalar_lea.sflag [#allocation4], %s699_s18  ;;  %s512_s15 = scalar_lea.vmem %s294_s4, 128 }
  0x2f   : > { %418 = vmatmul.mubr.f32.vlgmr.msra.gmra.mxu0 %v193_v1  ;;  %s408_s28 = sshll.u32 %s182_s27, 3  ;;  %p513_p8 = scmp.ne.s32.totalorder %s294_s4, %s512_s15 }
  0x30   : > { %s184_s30 = scalar_lea.vmem %s762_s2, %s408_s28  ;;  %s597_s16 = smov [#allocation5]  }
  0x31   : > { %192 = vst.msk [vmem:[%s184_s30] sm:$0xff] %vm191_vm2, %v595_v0  ;;  %p514_p12 = pnand %p513_p8, %p664_p9  ;;  %s516_s12 = sshll.u32 %s597_s16, 4  ;;  %s517_s12 = int_to_ptr.vmem [resolvable:$false] %s516_s12 }
  0x32   : > { %v267_v5 = vld [vmem:[%s174_s26] sm:$0xff]  ;;  %s518_s19 = scalar_lea.vmem %s517_s12, 256  ;;  %p519_p1 = scmp.lt.s32.totalorder %s294_s4, %s517_s12 }
  0x33   : > { %p515_p0 = pneg %p514_p12  ;;  %p520_p2 = scmp.lt.s32.totalorder %s518_s19, %s512_s15 }
  0x35   : > { %p521_p3 = por %p520_p2, %p519_p1 }
  0x37   : > { %p522_p5 = pnand %p521_p3, %p515_p0 }
  0x38   : > { %v271_v2 = vld [vmem:[%s184_s30] sm:$0xff] }
  0xb5   : > { %v265_v3 = vpop.xlane.xlu0 %264 }
  0xb6   : > { %v272_v4 = vadd.f32 %v271_v2, %v265_v3 }
  0xb8   : > { %274 = vst.msk [vmem:[%s184_s30] sm:$0xff] %vm191_vm2, %v272_v4 }
  0xef   : > { %v260_v6 = vpop.f32.mrf.mxu0 }
  0xf0   : > { %v268_v7 = vadd.f32 %v267_v5, %v260_v6 }
  0xf1   : > { %v419_v8 = vpop.f32.mrf.mxu0 }
  0xf2   : > { %270 = vst.msk [vmem:[%s174_s26] sm:$0xff] %vm189_vm0, %v268_v7 }
  0xf3   : > { %525 = shalt.err (!%p522_p5)
}
  0xf4   : > { %s526_s20 = scalar_lea.hbm %s717_s7, 128  ;;  %s530_s26 = scalar_lea.hbm %s761_s1, 256 }
  0xf5   : > { %p527_p6 = scmp.ne.s32.totalorder %s717_s7, %s526_s20  ;;  %p531_p4 = scmp.lt.s32.totalorder %s717_s7, %s761_s1 }
  0xf6   : > { %p532_p13 = scmp.lt.s32.totalorder %s530_s26, %s526_s20 }
  0xf7   : > { %p528_p7 = pnand %p527_p6, %p664_p9 }
  0xf8   : > { %p533_p11 = por %p532_p13, %p531_p4 }
  0xf9   : > { %p529_p10 = pneg %p528_p7 }
  0xfb   : > { %p534_p8 = pnand %p533_p11, %p529_p10 }
  0xfd   : > { %537 = shalt.err (!%p534_p8)
}
  0xfe   : > { %422 = dma.vmem_to_hbm [thread:$0]  (%p664_p9), %s294_s4, 128, %s717_s7, %s276_s8  }
  0xff PF: > { %s308_s21 = sand.u32 1, %s572_s9   ;;  %p768_p12 = scmp.ne.s32.totalorder %s766_s24, 0 }
 0x100   : > { %p769_p0 = scmp.ge.s32.totalorder %s592_s14, 2  ;;  %s309_s29 = scalar_lea.sflag [#allocation4], %s308_s21 }
 0x102   : > { %p429_p1 = pnand %p769_p0, %p768_p12 }
 0x104   : > { %p430_p2 = pneg %p429_p1 }
 0x106   : > { %567 = dma.done.wait (%p430_p2), %s309_s29, 128  }
 0x107   : > { %569 = vsyncadd (%p430_p2), %s309_s29, 4294967168  ;;  %s19_s14 = sadd.s32 1, %s592_s14   ;;  %s770_s9 = smov %s576_s10 }
 0x108   : > { %p16_p3 = scmp.ge.s32.totalorder %s19_s14, 4   ;;  %s771_s10 = smov %s580_s11 }
 0x109   : > { %s772_s11 = smov %s669_s23  ;;  %s773_s12 = smov %s588_s13 }
 0x10a   : > { %s774_s13 = smov %s776_s17  ;;  %18 = sbr.rel (!%p16_p3) target bundleno = 6 (0x6), region = 85 }
 0x10f   :  { %321 = vsyncpa [#allocation3], 1 }
 0x110   :  { %323 = vsyncpa [#allocation3 + $0x1], 1 }
 0x111   :  { %324 = vsyncpa [#allocation4], 1 }
 0x112   :  { %326 = vsyncpa [#allocation4 + $0x1], 1 }

</bundles_post_ra>
